<compile_context>
chip_gen: v5e
topology: v5e:2x2
jax: 0.10.0
libtpu: 0.0.40
codegen_flags: <defaults>
</compile_context>

<pallas_src>
import functools

import jax
import jax.numpy as jnp
from jax.experimental import pallas as pl
from jax.experimental.pallas import tpu as pltpu


def _round_up(n, m):
    return ((n + m - 1) // m) * m


# -----------------------------------------------------------------------------
# Kernel: one batch tile, three lane-full bf16 matmuls, f32 accumulate.
# -----------------------------------------------------------------------------
def _ffpolicy_fused_kernel(x_ref, w1_ref, w2_ref, wh_ref, bias_ref,
                           hidden_ref, head_ref):
    HF = w1_ref.shape[1]          # fused hidden width (>= 2H, lane multiple)
    P = wh_ref.shape[1]           # fused head width   (>= A+1, lane multiple)

    x = x_ref[...]                                  # [TB, D]  bf16
    b1 = bias_ref[0:1, :HF]                         # [1, HF]  f32
    b2 = bias_ref[1:2, :HF]                         # [1, HF]  f32
    bh = bias_ref[2:3, :P]                          # [1, P]   f32

    # Layer 1: actor || critic fused -> one lane-full MXU pass.
    h1 = jnp.tanh(
        jnp.dot(x, w1_ref[...], preferred_element_type=jnp.float32) + b1
    )
    # Layer 2: block-diagonal fused weight -> one lane-full MXU pass.
    h2 = jnp.tanh(
        jnp.dot(h1.astype(w2_ref.dtype), w2_ref[...],
                preferred_element_type=jnp.float32) + b2
    )
    hidden_ref[...] = h2                            # lane-dense [TB, HF] store

    # Heads: logits (cols 0:A) and value (col A) in one lane-dense slab.
    head_ref[...] = (
        jnp.dot(h2.astype(wh_ref.dtype), wh_ref[...],
                preferred_element_type=jnp.float32) + bh
    )


# -----------------------------------------------------------------------------
# One-time weight fusion / packing (done outside the kernel).
# Returns (arrays_dict, static_dims_dict).  Only arrays go through jit.
# -----------------------------------------------------------------------------
def fuse_params(p, *, dtype=jnp.bfloat16, min_width=128):
    D, H = p["a1w"].shape
    A = p["dw"].shape[1]
    HF = max(min_width, _round_up(2 * H, 128))      # fused hidden width
    P = max(128, _round_up(A + 1, 128))             # fused head width
    PW = max(HF, P)                                 # packed-bias lane width

    w1 = jnp.zeros((D, HF), jnp.float32)
    w1 = w1.at[:, :H].set(p["a1w"]).at[:, H:2 * H].set(p["v1w"])

    w2 = jnp.zeros((HF, HF), jnp.float32)
    w2 = w2.at[:H, :H].set(p["a2w"]).at[H:2 * H, H:2 * H].set(p["v2w"])

    wh = jnp.zeros((HF, P), jnp.float32)
    wh = wh.at[:H, :A].set(p["dw"]).at[H:2 * H, A:A + 1].set(p["v3w"])

    bias = jnp.zeros((8, PW), jnp.float32)
    bias = bias.at[0, :H].set(p["a1b"][0]).at[0, H:2 * H].set(p["v1b"][0])
    bias = bias.at[1, :H].set(p["a2b"][0]).at[1, H:2 * H].set(p["v2b"][0])
    bias = bias.at[2, :A].set(p["db"][0]).at[2, A:A + 1].set(p["v3b"][0])

    arrays = {
        "w1": w1.astype(dtype), "w2": w2.astype(dtype), "wh": wh.astype(dtype),
        "bias": bias,                                 # f32, single (8, PW) tile
    }
    dims = {"H": int(H), "A": int(A)}                 # plain Python ints (static)
    return arrays, dims


# -----------------------------------------------------------------------------
# Wrapper: batch-tiled pallas_call + output slicing.
# H, A, block_b are static; HF / P come from (static) weight shapes.
# -----------------------------------------------------------------------------
@functools.partial(jax.jit, static_argnames=("H", "A", "block_b"))
def _ffpolicy_forward_impl(x, w1, w2, wh, bias, *, H, A, block_b=256):
    B, D = x.shape
    HF = w1.shape[1]
    P = wh.shape[1]
    mm_dtype = w1.dtype

    # Batch tile: multiple of 8 sublanes, capped at block_b; pad B to a multiple.
    TB = _round_up(min(block_b, _round_up(B, 8)), 8)
    Bp = _round_up(B, TB)
    xp = x.astype(mm_dtype)
    if Bp != B:
        xp = jnp.pad(xp, ((0, Bp - B), (0, 0)))

    grid = (Bp // TB,)
    hidden, head = pl.pallas_call(
        _ffpolicy_fused_kernel,
        grid=grid,
        in_specs=[
            pl.BlockSpec((TB, D), lambda i: (i, 0)),         # x: batch-tiled
            pl.BlockSpec(w1.shape, lambda i: (0, 0)),        # weights resident
            pl.BlockSpec(w2.shape, lambda i: (0, 0)),
            pl.BlockSpec(wh.shape, lambda i: (0, 0)),
            pl.BlockSpec(bias.shape, lambda i: (0, 0)),
        ],
        out_specs=(
            pl.BlockSpec((TB, HF), lambda i: (i, 0)),        # lane-dense slabs
            pl.BlockSpec((TB, P), lambda i: (i, 0)),
        ),
        out_shape=(
            jax.ShapeDtypeStruct((Bp, HF), jnp.float32),     # actor||critic hidden
            jax.ShapeDtypeStruct((Bp, P), jnp.float32),      # logits||value
        ),
        compiler_params=pltpu.CompilerParams(
            dimension_semantics=("parallel",),               # v7x: 2nd TensorCore
        ),
    )(xp, w1, w2, wh, bias)

    actor = hidden[:B, :H]           # actor features x
    logits = head[:B, :A]            # categorical logits
    value = head[:B, A:A + 1]        # critic value
    return value, actor, logits


def ffpolicy_forward(x, fused, *, block_b=256):
    """Fused FFPolicy forward. Returns (value, actor_features, logits)."""
    arrays, dims = fused
    return _ffpolicy_forward_impl(
        x, arrays["w1"], arrays["w2"], arrays["wh"], arrays["bias"],
        H=dims["H"], A=dims["A"], block_b=block_b)


def ffpolicy_act(x, states, masks, fused, deterministic=False, key=None):
    """FFPolicy.act(): (value, action, action_log_probs, states).

    Categorical sampling / log-prob gather is cheap plain-JAX glue outside the
    kernel. FF policy: no recurrence, states pass through (masks unused).
    """
    value, actor, logits = ffpolicy_forward(x, fused)
    log_probs = jax.nn.log_softmax(logits, axis=-1)
    if deterministic or key is None:
        action = jnp.argmax(log_probs, axis=-1, keepdims=True)
    else:
        action = jax.random.categorical(key, logits, axis=-1)[:, None]
    action_log_probs = jnp.take_along_axis(log_probs, action, axis=-1)
    return value, action, action_log_probs, states


# -----------------------------------------------------------------------------
# Param init in the original (per-layer, [in, out]) layout.
# -----------------------------------------------------------------------------
def init_params(key, obs_dim, hidden, num_actions):
    ks = jax.random.split(key, 6)
    s_in = 1.0 / jnp.sqrt(obs_dim)
    s_h = 1.0 / jnp.sqrt(hidden)
    return {
        "a1w": jax.random.normal(ks[0], (obs_dim, hidden), jnp.float32) * s_in,
        "a1b": jnp.zeros((1, hidden), jnp.float32),
        "a2w": jax.random.normal(ks[1], (hidden, hidden), jnp.float32) * s_h,
        "a2b": jnp.zeros((1, hidden), jnp.float32),
        "v1w": jax.random.normal(ks[2], (obs_dim, hidden), jnp.float32) * s_in,
        "v1b": jnp.zeros((1, hidden), jnp.float32),
        "v2w": jax.random.normal(ks[3], (hidden, hidden), jnp.float32) * s_h,
        "v2b": jnp.zeros((1, hidden), jnp.float32),
        "v3w": jax.random.normal(ks[4], (hidden, 1), jnp.float32) * s_h,
        "v3b": jnp.zeros((1, 1), jnp.float32),
        "dw": jax.random.normal(ks[5], (hidden, num_actions), jnp.float32) * s_h * 0.01,
        "db": jnp.zeros((1, num_actions), jnp.float32),
    }


if __name__ == "__main__":
    B, D, H, A = 16, 32, 64, 6   # small demo shapes; 2H = 128 fills the lanes

    key = jax.random.PRNGKey(0)
    k_x, k_p = jax.random.split(key)
    x = jax.random.normal(k_x, (B, D), jnp.float32)
    states = jnp.zeros((B, 1), jnp.float32)   # unused by FF policy, passed through
    masks = jnp.ones((B, 1), jnp.float32)

    params = init_params(k_p, D, H, A)
    fused = fuse_params(params)               # one-time fusion / bf16 cast

    # Use block_b=8 so the demo exercises the batch grid (grid=(2,)).
    value, actor, logits = ffpolicy_forward(x, fused, block_b=8)
    v2, action, action_log_probs, states_out = ffpolicy_act(
        x, states, masks, fused, deterministic=True
    )
    jax.block_until_ready((value, actor, logits, v2, action, action_log_probs))

    # --- correctness checks -------------------------------------------------
    def ref_forward(x, p, cast):
        c = (lambda a: a.astype(jnp.bfloat16).astype(jnp.float32)) if cast else (lambda a: a)
        xc = c(x)
        h = jnp.tanh(xc @ c(p["v1w"]) + p["v1b"])
        h = jnp.tanh(c(h) @ c(p["v2w"]) + p["v2b"])
        v = c(h) @ c(p["v3w"]) + p["v3b"]
        a = jnp.tanh(xc @ c(p["a1w"]) + p["a1b"])
        a = jnp.tanh(c(a) @ c(p["a2w"]) + p["a2b"])
        l = c(a) @ c(p["dw"]) + p["db"]
        return v, a, l

    # Tight check vs. a reference using identically bf16-rounded operands
    # (validates the fusion / packing exactly).
    v_r, a_r, l_r = ref_forward(x, params, cast=True)
    assert jnp.allclose(value, v_r, atol=2e-3, rtol=2e-3), "value mismatch (bf16 ref)"
    assert jnp.allclose(actor, a_r, atol=2e-3, rtol=2e-3), "actor mismatch (bf16 ref)"
    assert jnp.allclose(logits, l_r, atol=2e-3, rtol=2e-3), "logits mismatch (bf16 ref)"

    # Loose sanity check vs. the pure-f32 reference (bf16 operand rounding).
    v_f, a_f, l_f = ref_forward(x, params, cast=False)
    assert jnp.allclose(value, v_f, atol=5e-2, rtol=5e-2), "value mismatch (f32 ref)"
    assert jnp.allclose(actor, a_f, atol=5e-2, rtol=5e-2), "actor mismatch (f32 ref)"
    assert jnp.allclose(logits, l_f, atol=5e-2, rtol=5e-2), "logits mismatch (f32 ref)"

    print("KERNEL_OK")
</pallas_src>

<mosaic_0001>
module attributes {stable_mosaic.version = 11 : i64} {
  func.func @_ffpolicy_fused_kernel(%arg0: i32, %arg1: memref<8x32xbf16, #tpu.memory_space<vmem>>, %arg2: memref<32x128xbf16, #tpu.memory_space<vmem>>, %arg3: memref<128x128xbf16, #tpu.memory_space<vmem>>, %arg4: memref<128x128xbf16, #tpu.memory_space<vmem>>, %arg5: memref<8x128xf32, #tpu.memory_space<vmem>>, %arg6: memref<8x128xf32, #tpu.memory_space<vmem>>, %arg7: memref<8x128xf32, #tpu.memory_space<vmem>>) attributes {dimension_semantics = [#tpu.dimension_semantics<parallel>], iteration_bounds = array<i64: 2>, scalar_prefetch = 0 : i64, scratch_operands = 0 : i64, tpu.core_type = #tpu.core_type<tc>, window_params = [{transform_indices = @transform_0, window_bounds = array<i64: 8, 32>}, {pipeline_mode = #tpu.pipeline_mode<synchronous>, transform_indices = @transform_1, window_bounds = array<i64: 32, 128>}, {pipeline_mode = #tpu.pipeline_mode<synchronous>, transform_indices = @transform_2, window_bounds = array<i64: 128, 128>}, {pipeline_mode = #tpu.pipeline_mode<synchronous>, transform_indices = @transform_3, window_bounds = array<i64: 128, 128>}, {pipeline_mode = #tpu.pipeline_mode<synchronous>, transform_indices = @transform_4, window_bounds = array<i64: 8, 128>}, {transform_indices = @transform_5, window_bounds = array<i64: 8, 128>}, {transform_indices = @transform_6, window_bounds = array<i64: 8, 128>}]} {
    %c0 = arith.constant 0 : index
    %c0_0 = arith.constant 0 : index
    %0 = vector.load %arg1[%c0, %c0_0] : memref<8x32xbf16, #tpu.memory_space<vmem>>, vector<8x32xbf16>
    %c0_1 = arith.constant 0 : index
    %c0_2 = arith.constant 0 : index
    %1 = vector.load %arg5[%c0_1, %c0_2] : memref<8x128xf32, #tpu.memory_space<vmem>>, vector<1x128xf32>
    %c1 = arith.constant 1 : index
    %c0_3 = arith.constant 0 : index
    %2 = vector.load %arg5[%c1, %c0_3] : memref<8x128xf32, #tpu.memory_space<vmem>>, vector<1x128xf32>
    %c2 = arith.constant 2 : index
    %c0_4 = arith.constant 0 : index
    %3 = vector.load %arg5[%c2, %c0_4] : memref<8x128xf32, #tpu.memory_space<vmem>>, vector<1x128xf32>
    %c0_5 = arith.constant 0 : index
    %c0_6 = arith.constant 0 : index
    %4 = vector.load %arg2[%c0_5, %c0_6] : memref<32x128xbf16, #tpu.memory_space<vmem>>, vector<32x128xbf16>
    %cst = arith.constant dense<0.000000e+00> : vector<8x128xf32>
    %5 = tpu.matmul %0, %4, %cst {dimension_numbers = #tpu.dot_dimension_numbers<[1], [0], [0], [1], [0, 0, 1, 1], [], []>} : vector<8x32xbf16>, vector<32x128xbf16>, vector<8x128xf32> -> vector<8x128xf32>
    %6 = vector.broadcast %1 : vector<1x128xf32> to vector<8x128xf32>
    %7 = arith.addf %5, %6 : vector<8x128xf32>
    %8 = math.tanh %7 : vector<8x128xf32>
    %9 = arith.truncf %8 : vector<8x128xf32> to vector<8x128xbf16>
    %c0_7 = arith.constant 0 : index
    %c0_8 = arith.constant 0 : index
    %10 = vector.load %arg3[%c0_7, %c0_8] : memref<128x128xbf16, #tpu.memory_space<vmem>>, vector<128x128xbf16>
    %cst_9 = arith.constant dense<0.000000e+00> : vector<8x128xf32>
    %11 = tpu.matmul %9, %10, %cst_9 {dimension_numbers = #tpu.dot_dimension_numbers<[1], [0], [0], [1], [0, 0, 1, 1], [], []>} : vector<8x128xbf16>, vector<128x128xbf16>, vector<8x128xf32> -> vector<8x128xf32>
    %12 = vector.broadcast %2 : vector<1x128xf32> to vector<8x128xf32>
    %13 = arith.addf %11, %12 : vector<8x128xf32>
    %14 = math.tanh %13 : vector<8x128xf32>
    %c0_10 = arith.constant 0 : index
    %c0_11 = arith.constant 0 : index
    %15 = vector.load %arg6[%c0_10, %c0_11] : memref<8x128xf32, #tpu.memory_space<vmem>>, vector<8x128xf32>
    tpu.vector_store %arg6[%c0_10, %c0_11], %14 {strides = array<i32>} : memref<8x128xf32, #tpu.memory_space<vmem>>, vector<8x128xf32>,
    %16 = arith.truncf %14 : vector<8x128xf32> to vector<8x128xbf16>
    %c0_12 = arith.constant 0 : index
    %c0_13 = arith.constant 0 : index
    %17 = vector.load %arg4[%c0_12, %c0_13] : memref<128x128xbf16, #tpu.memory_space<vmem>>, vector<128x128xbf16>
    %cst_14 = arith.constant dense<0.000000e+00> : vector<8x128xf32>
    %18 = tpu.matmul %16, %17, %cst_14 {dimension_numbers = #tpu.dot_dimension_numbers<[1], [0], [0], [1], [0, 0, 1, 1], [], []>} : vector<8x128xbf16>, vector<128x128xbf16>, vector<8x128xf32> -> vector<8x128xf32>
    %19 = vector.broadcast %3 : vector<1x128xf32> to vector<8x128xf32>
    %20 = arith.addf %18, %19 : vector<8x128xf32>
    %c0_15 = arith.constant 0 : index
    %c0_16 = arith.constant 0 : index
    %21 = vector.load %arg7[%c0_15, %c0_16] : memref<8x128xf32, #tpu.memory_space<vmem>>, vector<8x128xf32>
    tpu.vector_store %arg7[%c0_15, %c0_16], %20 {strides = array<i32>} : memref<8x128xf32, #tpu.memory_space<vmem>>, vector<8x128xf32>,
    return
  }
  func.func @transform_0(%arg0: i32) -> (i32, i32) {
    %c0_i32 = arith.constant 0 : i32
    %c0_i32_0 = arith.constant 0 : i32
    return %arg0, %c0_i32 : i32, i32
  }
  func.func @transform_1(%arg0: i32) -> (i32, i32) {
    %c0_i32 = arith.constant 0 : i32
    %c0_i32_0 = arith.constant 0 : i32
    %c0_i32_1 = arith.constant 0 : i32
    return %c0_i32, %c0_i32_0 : i32, i32
  }
  func.func @transform_2(%arg0: i32) -> (i32, i32) {
    %c0_i32 = arith.constant 0 : i32
    %c0_i32_0 = arith.constant 0 : i32
    %c0_i32_1 = arith.constant 0 : i32
    return %c0_i32, %c0_i32_0 : i32, i32
  }
  func.func @transform_3(%arg0: i32) -> (i32, i32) {
    %c0_i32 = arith.constant 0 : i32
    %c0_i32_0 = arith.constant 0 : i32
    %c0_i32_1 = arith.constant 0 : i32
    return %c0_i32, %c0_i32_0 : i32, i32
  }
  func.func @transform_4(%arg0: i32) -> (i32, i32) {
    %c0_i32 = arith.constant 0 : i32
    %c0_i32_0 = arith.constant 0 : i32
    %c0_i32_1 = arith.constant 0 : i32
    return %c0_i32, %c0_i32_0 : i32, i32
  }
  func.func @transform_5(%arg0: i32) -> (i32, i32) {
    %c0_i32 = arith.constant 0 : i32
    %c0_i32_0 = arith.constant 0 : i32
    return %arg0, %c0_i32 : i32, i32
  }
  func.func @transform_6(%arg0: i32) -> (i32, i32) {
    %c0_i32 = arith.constant 0 : i32
    %c0_i32_0 = arith.constant 0 : i32
    return %arg0, %c0_i32 : i32, i32
  }
}

</mosaic_0001>

<bundles_post_ra>
// kernel: _ffpolicy_forward_impl.1
= control target key start
LH: loop header
LB: loop body
LE: loop exit
PB: predicated region body
PF: predicated region fallthrough
CT: control target
= control target key end

     0   :  { %s1099_s0 = inlined_call_operand.vmem [shape: bf16[16,32], index: 0, kind: input, shape index: {}]   ;;  %s1100_s1 = inlined_call_operand.vmem [shape: bf16[32,128], index: 1, kind: input, shape index: {}]   ;;  %s1101_s2 = inlined_call_operand.hbm [shape: bf16[128,128], index: 2, kind: input, shape index: {}]   ;;  %s1102_s3 = inlined_call_operand.hbm [shape: bf16[128,128], index: 3, kind: input, shape index: {}]   ;;  %s1103_s4 = inlined_call_operand.vmem [shape: f32[8,128], index: 4, kind: input, shape index: {}]   ;;  %s1104_s5 = inlined_call_operand.hbm [shape: f32[16,128], index: 5, kind: output, shape index: {0}]   ;;  %s1105_s6 = inlined_call_operand.vmem [shape: f32[16,128], index: 6, kind: output, shape index: {1}]  }
   0x1   :  { %1106 = sst [smem:[#allocation11_spill]] %s1099_s0 }
   0x2   :  { %12 = vsyncpa [#allocation3], 0 }
   0x3   :  { %13 = vsyncpa [#allocation6], 0 }
   0x4   :  { %14 = vsyncpa [#allocation4], 0 }
   0x5   :  { %16 = vsyncpa [#allocation4 + $0x1], 0  ;;  %s967_s21 = smov 0   ;;  %s969_s22 = smov 0  }
   0x6   :  { %s971_s23 = smov 0   ;;  %s973_s24 = smov 0  }
   0x7 LB: > { %s988_s25 = sadd.s32 4294967295, %s926_s24   ;;  %s621_s26 = sadd.s32 4294967294, %s926_s24   ;;  %s926_s24 = sphi %s973_s24, %s1114_s24   ;;  %s922_s23 = sphi %s971_s23, %s1113_s23   ;;  %s918_s22 = sphi %s969_s22, %s1112_s22   ;;  %s914_s21 = sphi %s967_s21, %s1111_s21  }
   0x8   : > { %s992_s27 = sadd.s32 1, %s926_s24   ;;  %s139_s28 = sadd.s32 1, %s922_s23 }
   0x9   : > { %s136_s29 = ssub.s32 %s926_s24, %s992_s27  ;;  %p149_p0 = scmp.ne.s32.totalorder %s922_s23, %s918_s22 }
   0xa   : > { %p137_p1 = scmp.eq.s32.totalorder %s136_s29, 0  ;;  %p150_p2 = scmp.eq.s32.totalorder %s988_s25, 1 }
   0xb   : > { %p155_p3 = scmp.ne.s32.totalorder %s918_s22, %s914_s21  ;;  %p156_p4 = scmp.eq.s32.totalorder %s621_s26, 1 }
   0xc   : > { %s1003_s30 = scalar_select %p137_p1, %s922_s23, %s139_s28  }
   0xd   : > { %p1005_p5 = por %p150_p2, %p149_p0  ;;  %p1009_p6 = por %p156_p4, %p155_p3 }
   0xe   : > { %p622_p7 = scmp.ge.s32.totalorder %s926_s24, 1  ;;  %p189_p8 = scmp.lt.s32.totalorder %s926_s24, 3 }
   0xf   : > { %p748_p9 = scmp.eq.s32.totalorder %s988_s25, 0  ;;  %s203_s12 = sshll.u32 %s1101_s2, 4  ;;  %s204_s12 = int_to_ptr.hbm [resolvable:$true] %s203_s12 }
  0x10   : > { %p1016_p10 = pnand %p622_p7, %p189_p8  ;;  %s928_s13 = smov [#allocation2]  }
  0x11   : > { %s205_s14 = sshll.u32 %s928_s13, 4  ;;  %s217_s17 = sshll.u32 %s1102_s3, 4  ;;  %s206_s14 = int_to_ptr.vmem [resolvable:$true] %s205_s14  ;;  %s218_s17 = int_to_ptr.hbm [resolvable:$true] %s217_s17 }
  0x12   : > { %p737_p11 = pneg %p1016_p10  ;;  %s929_s18 = smov 64  }
  0x13   : > { %s930_s19 = smov 4   ;;  %s931_s20 = smov [#allocation5]  }
  0x14   : > { %p738_p12 = pnand %p748_p9, %p737_p11  ;;  %s219_s26 = sshll.u32 %s931_s20, 4  ;;  %s220_s26 = int_to_ptr.vmem [resolvable:$true] %s219_s26 }
  0x15   : > { %245 = sbr.rel (%p1016_p10) target bundleno = 451 (0x1c3), region = 40 }
  0x16   : > { %740 = dma.hbm_to_vmem [thread:$0]  (!%p738_p12), %s204_s12, 1024, %s206_s14, [#allocation3], %s929_s18, %s929_s18, %s930_s19  }
  0x17   : > { %743 = dma.hbm_to_vmem [thread:$0]  (!%p738_p12), %s218_s17, 1024, %s220_s26, [#allocation6], %s929_s18, %s929_s18, %s930_s19  }
  0x1a   : > { %901 = dma.done.wait (%p748_p9), [#allocation3], 1024  }
  0x1b   : > { %903 = vsyncadd (%p748_p9), [#allocation3], 4294966272 }
  0x1c   : > { %905 = dma.done.wait (%p748_p9), [#allocation6], 1024  }
  0x1d   : > { %907 = vsyncadd (%p748_p9), [#allocation6], 4294966272  ;;  %p284_p13 = scmp.lt.s32.totalorder %s988_s25, 1  ;;  %v710_v0 = vld [vmem:[%s1100_s1 + $0x8] sm:$0xff]  ;;  %v718_v1 = vld [vmem:[#allocation2 + $0x38] sm:$0xff]  ;;  %s1110_s0 = sld [smem:[#allocation11_spill]] }
  0x1e   : > { %324 = vmatpush.bf16.msra.mxu0 %v710_v0  ;;  %v709_v2 = vld [vmem:[%s1100_s1] sm:$0xff]  ;;  %398 = vmatpush.bf16.msra.mxu1 %v718_v1  ;;  %v717_v3 = vld [vmem:[#allocation2 + $0x30] sm:$0xff]  ;;  %vm314_vm0 = vcmask 261120   ;;  %v716_v5 = vld [vmem:[#allocation2 + $0x28] sm:$0xff]  ;;  %s275_s20 = sand.u32 1, %s918_s22   ;;  %s706_s9 = sshll.u32 %s988_s25, 3 }
  0x1f   : > { %s1042_s28 = scalar_select %p284_p13, %s988_s25, 1  ;;  %v715_v6 = vld [vmem:[#allocation2 + $0x20] sm:$0xff]  ;;  %v714_v7 = vld [vmem:[#allocation2 + $0x18] sm:$0xff]  ;;  %v713_v8 = vld [vmem:[#allocation2 + $0x10] sm:$0xff] }
  0x20   : > { %v712_v9 = vld [vmem:[#allocation2 + $0x8] sm:$0xff]  ;;  %v711_v10 = vld [vmem:[#allocation2] sm:$0xff]  ;;  %v726_v11 = vld [vmem:[#allocation5 + $0x38] sm:$0xff]  ;;  %s629_s26 = sshll.u32 %s275_s20, 3  ;;  %s508_s12 = scalar_lea.hbm %s1104_s5, %s706_s9 }
  0x21   : > { %s630_s10 = sshll.u32 %s1042_s28, 2  ;;  %479 = vmatpush.bf16.msra.mxu2 %v726_v11  ;;  %v725_v12 = vld [vmem:[#allocation5 + $0x30] sm:$0xff]  ;;  %v724_v13 = vld [vmem:[#allocation5 + $0x28] sm:$0xff]  ;;  %v723_v14 = vld [vmem:[#allocation5 + $0x20] sm:$0xff]  ;;  %s277_s29 = scalar_lea.vmem [#allocation7], %s629_s26 }
  0x22   : > { %325 = vmatpush.bf16.msra.mxu0 %v709_v2  ;;  %399 = vmatpush.bf16.msra.mxu1 %v717_v3  ;;  %v722_v15 = vld [vmem:[#allocation5 + $0x18] sm:$0xff]  ;;  %v789_v16 = vld [vmem:[%s1103_s4] ss:$0 sm:$0xff]  ;;  %v721_v22 = vld [vmem:[#allocation5 + $0x10] sm:$0xff]  ;;  %s510_s13 = sshll.u32 %s277_s29, 4  ;;  %s512_s14 = sshll.u32 %s508_s12, 4  ;;  %s511_s13 = int_to_ptr.vmem [resolvable:$true] %s510_s13  ;;  %s513_s14 = int_to_ptr.hbm [resolvable:$true] %s512_s14 }
  0x23   : > { %s287_s15 = scalar_lea.vmem %s1110_s0, %s630_s10  ;;  %v720_v23 = vld [vmem:[#allocation5 + $0x8] sm:$0xff]  ;;  %v719_v24 = vld [vmem:[#allocation5] sm:$0xff]  ;;  %s870_s16 = sshra.s32 %s513_s14, 4  ;;  %s871_s16 = int_to_ptr.hbm [resolvable:$true] %s870_s16 }
  0x24   : > { %v293_v4 = vld [vmem:[%s287_s15] sm:$0xf]  ;;  %s494_s15 = scalar_lea.sflag [#allocation4], %s275_s20  ;;  %s872_s17 = scalar_lea.hbm %s871_s16, 8 }
  0x25   : > { %640 = vmatmul.msk.bf16.vlgmr.msra.gmra.mxu0 %vm314_vm0, %v293_v4  ;;  %480 = vmatpush.bf16.msra.mxu2 %v725_v12  ;;  %v790_v25 = vld [vmem:[%s1103_s4 + $0x1] ss:$0 sm:$0xff]  ;;  %p873_p0 = scmp.ne.s32.totalorder %s871_s16, %s872_s17  ;;  %s876_s25 = scalar_lea.hbm %s1104_s5, 16 }
  0x26   : > { %400 = vmatpush.bf16.msra.mxu1 %v716_v5  ;;  %p877_p3 = scmp.lt.s32.totalorder %s871_s16, %s1104_s5  ;;  %p878_p4 = scmp.lt.s32.totalorder %s876_s25, %s872_s17 }
  0x27   : > { %p874_p1 = pnand %p873_p0, %p1005_p5 }
  0x28   : > { %p879_p7 = por %p878_p4, %p877_p3 }
  0x29   : > { %481 = vmatpush.bf16.msra.mxu2 %v724_v13  ;;  %p875_p2 = pneg %p874_p1 }
  0x2a   : > { %401 = vmatpush.bf16.msra.mxu1 %v715_v6 }
  0x2b   : > { %p880_p8 = pnand %p879_p7, %p875_p2 }
  0x2d   : > { %482 = vmatpush.bf16.msra.mxu2 %v723_v14 }
  0x2e   : > { %402 = vmatpush.bf16.msra.mxu1 %v714_v7 }
  0x31   : > { %483 = vmatpush.bf16.msra.mxu2 %v722_v15 }
  0x32   : > { %403 = vmatpush.bf16.msra.mxu1 %v713_v8 }
  0x35   : > { %484 = vmatpush.bf16.msra.mxu2 %v721_v22 }
  0x36   : > { %404 = vmatpush.bf16.msra.mxu1 %v712_v9 }
  0x39   : > { %485 = vmatpush.bf16.msra.mxu2 %v720_v23 }
  0x3a   : > { %405 = vmatpush.bf16.msra.mxu1 %v711_v10 }
  0x3d   : > { %486 = vmatpush.bf16.msra.mxu2 %v719_v24 }
  0xa2   : > { %v327_v17 = vpop.f32.mrf.mxu0 }
  0xa3   : > { %v328_v18 = vadd.f32 %v789_v16, %v327_v17 }
  0xa5   : > { %792 = vtanh.f32 %v328_v18 }
  0xaa   : > { %v329_v19 = vpop.f32.mrf.mxu0 }
  0xab   : > { %v793_v20 = vpop.eup %792 }
  0xac   : > { %v332_v21 = vpack.c.bf16 %v793_v20, %v793_v20 }
  0xae   : > { %406 = vmatmul.bf16.vlgmr.msra.gmra.mxu1 %v332_v21 }
 0x12b   : > { %v407_v26 = vpop.f32.mrf.mxu1 }
 0x12c   : > { %v408_v27 = vadd.f32 %v790_v25, %v407_v26 }
 0x12e   : > { %794 = vtanh.f32 %v408_v27 }
 0x133   : > { %v409_v28 = vpop.f32.mrf.mxu1 }
 0x134   : > { %v795_v29 = vpop.eup %794 }
 0x135   : > { %v413_v30 = vpack.c.bf16 %v795_v29, %v795_v29  ;;  %412 = vst [vmem:[%s277_s29] sm:$0xff] %v795_v29 }
 0x137   : > { %487 = vmatmul.bf16.vlgmr.msra.gmra.mxu2 %v413_v30 }
 0x138   : > { %883 = shalt.err (!%p880_p8)
}
 0x139   : > { %735 = dma.vmem_to_hbm [thread:$0]  (%p1005_p5), %s511_s13, 128, %s513_s14, %s494_s15   ;;  %v791_v31 = vld [vmem:[%s1103_s4 + $0x2] ss:$0 sm:$0xff] }
 0x13a   : > { %s631_s20 = sshll.u32 %s1042_s28, 3 }
 0x13b   : > { %s291_s12 = scalar_lea.vmem %s1105_s6, %s631_s20 }
 0x1ba   : > { %v488_v32 = vpop.f32.mrf.mxu2 }
 0x1bb   : > { %v489_v33 = vadd.f32 %v791_v31, %v488_v32 }
 0x1bd   : > { %492 = vst [vmem:[%s291_s12] sm:$0xff] %v489_v33 }
 0x1c2   : > { %v490_v34 = vpop.f32.mrf.mxu2 }
 0x1c3 PF: > { %p752_p9 = scmp.ge.s32.totalorder %s926_s24, 2  ;;  %s527_s0 = sand.u32 1, %s914_s21  }
 0x1c4   : > { %s528_s7 = scalar_lea.sflag [#allocation4], %s527_s0 }
 0x1c5   : > { %p745_p5 = pnand %p752_p9, %p1009_p6 }
 0x1c7   : > { %p746_p10 = pneg %p745_p5 }
 0x1c9   : > { %909 = dma.done.wait (%p746_p10), %s528_s7, 128  }
 0x1ca   : > { %911 = vsyncadd (%p746_p10), %s528_s7, 4294967168  ;;  %p19_p11 = scmp.ge.s32.totalorder %s992_s27, 4   ;;  %s1111_s21 = smov %s918_s22 }
 0x1cb   : > { %s1112_s22 = smov %s922_s23  ;;  %s1113_s23 = smov %s1003_s30 }
 0x1cc   : > { %s1114_s24 = smov %s992_s27  ;;  %21 = sbr.rel (!%p19_p11) target bundleno = 7 (0x7), region = 96 }
 0x1d1   :  { %541 = vsyncpa [#allocation3], 1 }
 0x1d2   :  { %543 = vsyncpa [#allocation3 + $0x1], 1 }
 0x1d3   :  { %544 = vsyncpa [#allocation6], 1 }
 0x1d4   :  { %545 = vsyncpa [#allocation4], 1 }
 0x1d5   :  { %547 = vsyncpa [#allocation4 + $0x1], 1 }

</bundles_post_ra>
